<compile_context>
chip_gen: v6e
topology: v6e:2x2x1
jax: 0.10.0
libtpu: 0.0.40
codegen_flags: <defaults>
</compile_context>

<pallas_src>
import jax
import jax.numpy as jnp
from jax.experimental import pallas as pl
from jax.experimental.pallas import tpu as pltpu


def _mask_attention_kernel(w_ref, x_ref, m_ref, out_ref, sc_ref):
    # w_ref  : (1, D)      attention weight (Linear(D, 1, bias=False).weight)
    # x_ref  : (TB, L, D)  slab of batch rows
    # m_ref  : (TB, L)     mask (0 = masked position)
    # out_ref: (TB, D)     pooled outputs
    # sc_ref : (TB, L)     softmax scores
    x = x_ref[...].astype(jnp.float32)            # (TB, L, D)
    w = w_ref[...].astype(jnp.float32)            # (1, D) -> broadcasts (1,1,D)

    # scores = inputs @ W^T, on the VPU (mul) + XLU (lane reduce over D)
    scores = jnp.sum(x * w, axis=-1)              # (TB, L)

    mask = m_ref[...]                             # (TB, L)
    scores = jnp.where(mask == 0, -jnp.inf, scores)

    # Numerically stable softmax over L (exact divide; no approx reciprocal).
    # NOTE: a fully-masked row yields NaN probabilities, matching the PyTorch
    # reference behaviour.
    m_max = jnp.max(scores, axis=-1, keepdims=True)      # (TB, 1)
    e = jnp.exp(scores - m_max)                          # (TB, L)
    denom = jnp.sum(e, axis=-1, keepdims=True)           # (TB, 1)
    probs = e / denom                                    # (TB, L)

    # outputs = probs @ inputs, on the VPU/XLU (sublane reduce over L)
    out = jnp.sum(probs[:, :, None] * x, axis=1)         # (TB, D)

    out_ref[...] = out.astype(out_ref.dtype)
    sc_ref[...] = probs.astype(sc_ref.dtype)


def _choose_tb(B, L, D, itemsize, target_bytes=1 << 20):
    """Batch rows per block: ~1 MiB inputs tile, multiple of 8, capped at B."""
    tb = max(1, target_bytes // max(L * D * itemsize, 1))
    tb = (tb // 8) * 8
    if tb < 8:
        tb = 8
    if tb >= B:
        return B      # block equal to the full batch dim is always legal
    return tb


def mask_attention(inputs, mask_nonzero, weight, *, tb=None):
    """
    inputs       : (B, L, D)
    mask_nonzero : (B, L) (any numeric dtype; zeros mark masked positions) or None
    weight       : (1, D)  (Linear(D, 1, bias=False) weight)
    tb           : optional batch-rows-per-block (multiple of 8, or >= B)

    Returns (outputs (B, D), scores (B, 1, L)) — same as the PyTorch module.
    """
    B, L, D = inputs.shape
    if mask_nonzero is None:
        mask = jnp.ones((B, L), dtype=jnp.int32)
    else:
        mask = mask_nonzero.astype(jnp.int32).reshape(B, L)

    if tb is None:
        tb = _choose_tb(B, L, D, inputs.dtype.itemsize)
    if tb > B:
        tb = B

    nb = (B + tb - 1) // tb
    Bp = nb * tb
    if Bp != B:
        pad = Bp - B
        inputs_p = jnp.pad(inputs, ((0, pad), (0, 0), (0, 0)))
        # Pad mask rows with ones so padded rows don't produce NaN (rows are
        # dropped below anyway).
        mask_p = jnp.pad(mask, ((0, pad), (0, 0)), constant_values=1)
    else:
        inputs_p, mask_p = inputs, mask

    grid_spec = pltpu.PrefetchScalarGridSpec(
        num_scalar_prefetch=0,
        grid=(nb,),
        in_specs=[
            pl.BlockSpec((1, D), lambda b: (0, 0)),          # weight (shared)
            pl.BlockSpec((tb, L, D), lambda b: (b, 0, 0)),   # inputs slab
            pl.BlockSpec((tb, L), lambda b: (b, 0)),         # mask slab
        ],
        out_specs=[
            pl.BlockSpec((tb, D), lambda b: (b, 0)),         # outputs slab
            pl.BlockSpec((tb, L), lambda b: (b, 0)),         # scores slab
        ],
    )

    out, scores = pl.pallas_call(
        _mask_attention_kernel,
        out_shape=(
            jax.ShapeDtypeStruct((Bp, D), inputs.dtype),
            jax.ShapeDtypeStruct((Bp, L), jnp.float32),
        ),
        grid_spec=grid_spec,
        compiler_params=pltpu.CompilerParams(
            dimension_semantics=("parallel",)),
    )(weight, inputs_p, mask_p)

    return out[:B], scores[:B][:, None, :]


def _reference(inputs, mask_nonzero, weight):
    # Pure-JAX reference mirroring the PyTorch forward.
    scores = jnp.einsum("bld,od->bl", inputs, weight)           # (B, L)
    if mask_nonzero is not None:
        scores = jnp.where(mask_nonzero == 0, -jnp.inf, scores)
    scores = jax.nn.softmax(scores, axis=-1)[:, None, :]        # (B, 1, L)
    outputs = jnp.squeeze(jnp.matmul(scores, inputs), axis=1)   # (B, D)
    return outputs, scores


if __name__ == "__main__":
    key = jax.random.PRNGKey(0)
    k_in, k_w, k_m = jax.random.split(key, 3)

    # Primary small test: whole batch in one block (TB == B).
    B, L, D = 2, 8, 32
    inputs = jax.random.normal(k_in, (B, L, D), dtype=jnp.float32)
    bound = 1.0 / (D ** 0.5)
    weight = jax.random.uniform(k_w, (1, D), jnp.float32, -bound, bound)
    mask_nonzero = (jax.random.uniform(k_m, (B, L)) > 0.3).astype(jnp.int32)
    mask_nonzero = mask_nonzero.at[:, 0].set(1)   # keep at least one live pos

    out, scores = mask_attention(inputs, mask_nonzero, weight)
    jax.block_until_ready((out, scores))

    ref_out, ref_scores = _reference(inputs, mask_nonzero, weight)
    assert out.shape == (B, D) and scores.shape == (B, 1, L)
    assert jnp.allclose(out, ref_out, atol=1e-3, rtol=1e-3)
    assert jnp.allclose(scores, ref_scores, atol=1e-3, rtol=1e-3)

    # Secondary test: multi-block grid with batch padding (B not multiple of TB).
    B2 = 20
    k_in2, k_m2 = jax.random.split(jax.random.PRNGKey(1), 2)
    inputs2 = jax.random.normal(k_in2, (B2, L, D), dtype=jnp.float32)
    mask2 = (jax.random.uniform(k_m2, (B2, L)) > 0.3).astype(jnp.int32)
    mask2 = mask2.at[:, 0].set(1)

    out2, scores2 = mask_attention(inputs2, mask2, weight, tb=8)
    jax.block_until_ready((out2, scores2))

    ref_out2, ref_scores2 = _reference(inputs2, mask2, weight)
    assert out2.shape == (B2, D) and scores2.shape == (B2, 1, L)
    assert jnp.allclose(out2, ref_out2, atol=1e-3, rtol=1e-3)
    assert jnp.allclose(scores2, ref_scores2, atol=1e-3, rtol=1e-3)

    print("KERNEL_OK")
</pallas_src>

<mosaic_0001>
module attributes {stable_mosaic.version = 11 : i64} {
  func.func @_mask_attention_kernel(%arg0: i32, %arg1: memref<1x32xf32, #tpu.memory_space<vmem>>, %arg2: memref<2x8x32xf32, #tpu.memory_space<vmem>>, %arg3: memref<2x8xi32, #tpu.memory_space<vmem>>, %arg4: memref<2x32xf32, #tpu.memory_space<vmem>>, %arg5: memref<2x8xf32, #tpu.memory_space<vmem>>) attributes {dimension_semantics = [#tpu.dimension_semantics<parallel>], iteration_bounds = array<i64: 1>, scalar_prefetch = 0 : i64, scratch_operands = 0 : i64, tpu.core_type = #tpu.core_type<tc>, window_params = [{pipeline_mode = #tpu.pipeline_mode<synchronous>, transform_indices = @transform_0, window_bounds = array<i64: 1, 32>}, {transform_indices = @transform_1, window_bounds = array<i64: 2, 8, 32>}, {transform_indices = @transform_2, window_bounds = array<i64: 2, 8>}, {transform_indices = @transform_3, window_bounds = array<i64: 2, 32>}, {transform_indices = @transform_4, window_bounds = array<i64: 2, 8>}]} {
    %c0 = arith.constant 0 : index
    %c0_0 = arith.constant 0 : index
    %c0_1 = arith.constant 0 : index
    %0 = vector.load %arg2[%c0, %c0_0, %c0_1] : memref<2x8x32xf32, #tpu.memory_space<vmem>>, vector<2x8x32xf32>
    %c0_2 = arith.constant 0 : index
    %c0_3 = arith.constant 0 : index
    %1 = vector.load %arg1[%c0_2, %c0_3] : memref<1x32xf32, #tpu.memory_space<vmem>>, vector<1x32xf32>
    %2 = vector.shape_cast %1 : vector<1x32xf32> to vector<1x1x32xf32>
    %3 = vector.broadcast %2 : vector<1x1x32xf32> to vector<2x8x32xf32>
    %4 = arith.mulf %0, %3 : vector<2x8x32xf32>
    %cst = arith.constant dense<0.000000e+00> : vector<2x8xf32>
    %5 = vector.multi_reduction <add>, %4, %cst [2] : vector<2x8x32xf32> to vector<2x8xf32>
    %c0_4 = arith.constant 0 : index
    %c0_5 = arith.constant 0 : index
    %6 = vector.load %arg3[%c0_4, %c0_5] : memref<2x8xi32, #tpu.memory_space<vmem>>, vector<2x8xi32>
    %c0_i32 = arith.constant 0 : i32
    %7 = vector.broadcast %c0_i32 : i32 to vector<2x8xi32>
    %8 = arith.cmpi eq, %6, %7 : vector<2x8xi32>
    %cst_6 = arith.constant 0xFF800000 : f32
    %9 = vector.broadcast %cst_6 : f32 to vector<2x8xf32>
    %10 = arith.select %8, %9, %5 : vector<2x8xi1>, vector<2x8xf32>
    %cst_7 = arith.constant dense<0xFF800000> : vector<2xf32>
    %11 = vector.multi_reduction <maximumf>, %10, %cst_7 [1] : vector<2x8xf32> to vector<2xf32>
    %12 = vector.shape_cast %11 : vector<2xf32> to vector<2x1xf32>
    %13 = vector.broadcast %12 : vector<2x1xf32> to vector<2x8xf32>
    %14 = arith.subf %10, %13 : vector<2x8xf32>
    %15 = math.exp %14 : vector<2x8xf32>
    %cst_8 = arith.constant dense<0.000000e+00> : vector<2xf32>
    %16 = vector.multi_reduction <add>, %15, %cst_8 [1] : vector<2x8xf32> to vector<2xf32>
    %17 = vector.shape_cast %16 : vector<2xf32> to vector<2x1xf32>
    %18 = vector.broadcast %17 : vector<2x1xf32> to vector<2x8xf32>
    %19 = arith.divf %15, %18 : vector<2x8xf32>
    %20 = vector.shape_cast %19 : vector<2x8xf32> to vector<2x8x1xf32>
    %21 = vector.broadcast %20 : vector<2x8x1xf32> to vector<2x8x32xf32>
    %22 = arith.mulf %21, %0 : vector<2x8x32xf32>
    %cst_9 = arith.constant dense<0.000000e+00> : vector<2x32xf32>
    %23 = vector.multi_reduction <add>, %22, %cst_9 [1] : vector<2x8x32xf32> to vector<2x32xf32>
    %c0_10 = arith.constant 0 : index
    %c0_11 = arith.constant 0 : index
    %24 = vector.load %arg4[%c0_10, %c0_11] : memref<2x32xf32, #tpu.memory_space<vmem>>, vector<2x32xf32>
    tpu.vector_store %arg4[%c0_10, %c0_11], %23 {strides = array<i32>} : memref<2x32xf32, #tpu.memory_space<vmem>>, vector<2x32xf32>,
    %c0_12 = arith.constant 0 : index
    %c0_13 = arith.constant 0 : index
    %25 = vector.load %arg5[%c0_12, %c0_13] : memref<2x8xf32, #tpu.memory_space<vmem>>, vector<2x8xf32>
    tpu.vector_store %arg5[%c0_12, %c0_13], %19 {strides = array<i32>} : memref<2x8xf32, #tpu.memory_space<vmem>>, vector<2x8xf32>,
    return
  }
  func.func @transform_0(%arg0: i32) -> (i32, i32) {
    %c0_i32 = arith.constant 0 : i32
    %c0_i32_0 = arith.constant 0 : i32
    %c0_i32_1 = arith.constant 0 : i32
    return %c0_i32, %c0_i32_0 : i32, i32
  }
  func.func @transform_1(%arg0: i32) -> (i32, i32, i32) {
    %c0_i32 = arith.constant 0 : i32
    %c0_i32_0 = arith.constant 0 : i32
    %c0_i32_1 = arith.constant 0 : i32
    return %arg0, %c0_i32, %c0_i32_0 : i32, i32, i32
  }
  func.func @transform_2(%arg0: i32) -> (i32, i32) {
    %c0_i32 = arith.constant 0 : i32
    %c0_i32_0 = arith.constant 0 : i32
    return %arg0, %c0_i32 : i32, i32
  }
  func.func @transform_3(%arg0: i32) -> (i32, i32) {
    %c0_i32 = arith.constant 0 : i32
    %c0_i32_0 = arith.constant 0 : i32
    return %arg0, %c0_i32 : i32, i32
  }
  func.func @transform_4(%arg0: i32) -> (i32, i32) {
    %c0_i32 = arith.constant 0 : i32
    %c0_i32_0 = arith.constant 0 : i32
    return %arg0, %c0_i32 : i32, i32
  }
}

</mosaic_0001>

<bundles_post_ra>
// kernel: tpu_custom_call.1
= control target key start
LH: loop header
LB: loop body
LE: loop exit
PB: predicated region body
PF: predicated region fallthrough
CT: control target
= control target key end

     0   :  { %10 = vsyncpa [#allocation3], 0  ;;  %s313_s0 = inlined_call_operand.hbm [shape: f32[1,32], index: 0, kind: input, shape index: {}]   ;;  %s314_s1 = inlined_call_operand.hbm [shape: f32[2,8,32], index: 1, kind: input, shape index: {}]   ;;  %s315_s2 = inlined_call_operand.vmem [shape: s32[2,8], index: 2, kind: input, shape index: {}]   ;;  %s316_s3 = inlined_call_operand.hbm [shape: f32[2,32], index: 3, kind: output, shape index: {0}]   ;;  %s317_s4 = inlined_call_operand.hbm [shape: f32[2,8], index: 4, kind: output, shape index: {1}]  }
   0x1   :  { %11 = vsyncpa [#allocation6], 0 }
   0x2   :  { %12 = vsyncpa [#allocation4], 0 }
   0x3   :  { %13 = vsyncpa [#allocation9], 0  ;;  %s258_s15 = smov [#allocation2]   ;;  %s259_s17 = smov [#allocation5]  }
   0x4   :  { %s20_s16 = sshll.u32 %s258_s15, 4  ;;  %s29_s18 = sshll.u32 %s259_s17, 4  ;;  %s21_s16 = int_to_ptr.vmem [resolvable:$true] %s20_s16  ;;  %s30_s18 = int_to_ptr.vmem [resolvable:$true] %s29_s18 }
   0x5   :  { %s178_s19 = scalar_lea.vmem %s21_s16, 16  ;;  %s182_s20 = scalar_lea.vmem %s21_s16, 32 }
   0x6   :  { %p179_p0 = scmp.ne.s32.totalorder %s21_s16, %s178_s19  ;;  %p183_p1 = scmp.lt.s32.totalorder %s21_s16, %s21_s16 }
   0x7   :  { %p184_p2 = scmp.lt.s32.totalorder %s182_s20, %s178_s19 }
   0x9   :  { %p185_p3 = por %p184_p2, %p183_p1 }
   0xb   :  { %p186_p4 = pnand %p185_p3, %p179_p0 }
   0xd   :  { %189 = shalt.err (!%p186_p4)
}
   0xe   :  { %23 = dma.hbm_to_vmem [thread:$0]  %s313_s0, 16, %s21_s16, [#allocation3]  }
   0xf   :  { %s198_s23 = scalar_lea.vmem %s30_s18, 256  ;;  %p203_p6 = scmp.lt.s32.totalorder %s30_s18, %s30_s18 }
  0x10   :  { %p199_p5 = scmp.ne.s32.totalorder %s30_s18, %s198_s23  ;;  %p204_p7 = scmp.lt.s32.totalorder %s198_s23, %s198_s23 }
  0x12   :  { %p205_p8 = por %p204_p7, %p203_p6 }
  0x14   :  { %p206_p9 = pnand %p205_p8, %p199_p5 }
  0x16   :  { %209 = shalt.err (!%p206_p9)
}
  0x17   :  { %s260_s24 = smov 128   ;;  %s261_s25 = smov 8  }
  0x18   :  { %35 = dma.hbm_to_vmem [thread:$0]  %s314_s1, 256, %s30_s18, [#allocation6], %s260_s24, %s260_s24, %s261_s25  }
  0x19   :  { %250 = dma.done.wait [#allocation3], 16  }
  0x1a   :  { %251 = vsyncadd [#allocation3], 4294967280 }
  0x1b   :  { %252 = dma.done.wait [#allocation6], 256  }
  0x1c   :  { %253 = vsyncadd [#allocation6], 4294967040  ;;  %v44_v0 = vld [vmem:[#allocation5] sm:$0xff]  ;;  %v159_v1 = vld [vmem:[#allocation2] ss:$0 sm:$0xff]  ;;  %vm55_vm0 = vcmask 261120   ;;  %v66_v7 = vlaneseq }
  0x1d   :  { %v45_v2 = vld [vmem:[#allocation5 + $0x8] sm:$0xff]  ;;  %v53_v3 = vmul.f32 %v159_v1, %v44_v0  ;;  %v62_v12 = vld [vmem:[%s315_s2] sm:$0x3]  ;;  %vm76_vm1 = vcmask 1041409   ;;  %vm80_vm3 = vcmask 58368   ;;  %s262_s2 = smov [#allocation8]  }
  0x1e   :  { %v54_v4 = vmul.f32 %v159_v1, %v45_v2  ;;  %v67_v8 = vand.u32 127, %v66_v7  ;;  %v69_v9 = vshrl.u32 %v66_v7, 7  ;;  %vm63_vm2 = vcmp.eq.s32.totalorder %v62_v12, 0  ;;  %s145_s28 = sshll.u32 %s262_s2, 4  ;;  %s146_s28 = int_to_ptr.vmem [resolvable:$true] %s145_s28 }
  0x1f   :  { %v56_v5 = vsel %vm55_vm0, %v53_v3, 0.0  ;;  %s210_s29 = scalar_lea.vmem %s146_s28, 32  ;;  %p215_p11 = scmp.lt.s32.totalorder %s146_s28, %s146_s28 }
  0x20   :  { %57 = vadd.xlane.f32.xlu0 %v56_v5  ;;  %v59_v6 = vsel %vm55_vm0, %v54_v4, 0.0  ;;  %v70_v11 = vsub.s32 %v67_v8, %v69_v9  ;;  %v101_v25 = vsub.s32 1, %v69_v9  ;;  %v94_v26 = vsub.s32 0, %v69_v9  ;;  %p211_p10 = scmp.ne.s32.totalorder %s146_s28, %s210_s29  ;;  %p216_p12 = scmp.lt.s32.totalorder %s210_s29, %s210_s29 }
  0x22   :  { %p217_p13 = por %p216_p12, %p215_p11 }
  0x24   :  { %60 = vadd.xlane.f32.xlu0 %v59_v6  ;;  %p218_p0 = pnand %p217_p13, %p211_p10 }
  0xa9   :  { %v58_v10 = vpop.xlane.xlu0 %57 }
  0xaa   :  { %v71_v14 = vrot.slane %v58_v10, %v70_v11 }
  0xad   :  { %v61_v13 = vpop.xlane.xlu0 %60 }
  0xae   :  { %v75_v15 = vrot.slane %v61_v13, %v70_v11 }
  0xb0   :  { %v77_v16 = vsel %vm76_vm1, %v75_v15, %v71_v14 }
  0xb1   :  { %v79_v17 = vsel %vm63_vm2, -inf, %v77_v16 }
  0xb2   :  { %v81_v18 = vsel %vm80_vm3, %v79_v17, -inf }
  0xb3   :  { %82 = vmax.xlane.f32.xlu1 %v81_v18 }
 0x13c   :  { %v83_v19 = vpop.xlane.xlu1 %82 }
 0x13d   :  { %v84_v20 = vsub.f32 %v79_v17, %v83_v19 }
 0x13f   :  { %v85_v21 = vmul.f32 1.442695, %v84_v20 }
 0x141   :  { %166 = vpow2.f32 %v85_v21 }
 0x14e   :  { %v167_v22 = vpop.eup %166 }
 0x14f   :  { %v87_v23 = vsel %vm80_vm3, %v167_v22, 0.0 }
 0x150   :  { %88 = vadd.xlane.f32.xlu1 %v87_v23 }
 0x1d9   :  { %v89_v24 = vpop.xlane.xlu1 %88 }
 0x1da   :  { %168 = vrcp.f32 %v89_v24 }
 0x1e7   :  { %v169_v27 = vpop.eup %168 }
 0x1e8   :  { %v91_v28 = vmul.f32 %v169_v27, %v167_v22 }
 0x1ea   :  { %v102_v29 = vrot.slane %v91_v28, %v101_v25  ;;  %128 = vst.msk [vmem:[#allocation8] sm:$0x3] %vm80_vm3, %v91_v28  ;;  %v95_v30 = vrot.slane %v91_v28, %v94_v26 }
 0x1ec   :  { %104 = vbcast.lane.b32.xlu1 %v102_v29, 256  ;;  %97 = vbcast.lane.b32.xlu0 %v95_v30, 256 }
 0x1ed   :  { %221 = shalt.err (!%p218_p0)
}
 0x1ee   :  { %148 = dma.vmem_to_hbm [thread:$0]  %s146_s28, 32, %s317_s4, [#allocation9]   ;;  %vm126_vm4 = vcmask 254976  }
 0x1ef   :  { %s263_s6 = smov [#allocation7]  }
 0x1f0   :  { %s135_s4 = sshll.u32 %s263_s6, 4  ;;  %s136_s4 = int_to_ptr.vmem [resolvable:$true] %s135_s4 }
 0x1f1   :  { %s230_s7 = scalar_lea.vmem %s136_s4, 32  ;;  %p235_p2 = scmp.lt.s32.totalorder %s136_s4, %s136_s4 }
 0x1f2   :  { %p231_p1 = scmp.ne.s32.totalorder %s136_s4, %s230_s7  ;;  %p236_p3 = scmp.lt.s32.totalorder %s230_s7, %s230_s7 }
 0x1f4   :  { %p237_p4 = por %p236_p3, %p235_p2 }
 0x1f6   :  { %p238_p5 = pnand %p237_p4, %p231_p1 }
 0x25e   :  { %v105_v31 = vpop.permute.xlu1 %104  ;;  %v98_v32 = vpop.permute.xlu0 %97 }
 0x25f   :  { %v107_v33 = vmul.f32 %v105_v31, %v45_v2  ;;  %v106_v34 = vmul.f32 %v98_v32, %v44_v0 }
 0x261   :  { %v115_v35 = vsel %vm55_vm0, %v107_v33, 0.0  ;;  %v108_v36 = vsel %vm55_vm0, %v106_v34, 0.0 }
 0x262   :  { %v116_v37 = vrot.slane %v115_v35, 4  ;;  %v109_v38 = vrot.slane %v108_v36, 4 }
 0x264   :  { %v117_v39 = vadd.f32 %v116_v37, %v115_v35  ;;  %v110_v40 = vadd.f32 %v109_v38, %v108_v36 }
 0x266   :  { %v118_v41 = vrot.slane %v117_v39, 2  ;;  %v111_v42 = vrot.slane %v110_v40, 2 }
 0x268   :  { %v119_v43 = vadd.f32 %v118_v41, %v117_v39  ;;  %v112_v44 = vadd.f32 %v111_v42, %v110_v40 }
 0x26a   :  { %v120_v45 = vrot.slane %v119_v43, 1  ;;  %v113_v46 = vrot.slane %v112_v44, 1 }
 0x26c   :  { %v121_v47 = vadd.f32 %v120_v45, %v119_v43  ;;  %v114_v48 = vadd.f32 %v113_v46, %v112_v44 }
 0x26e   :  { %v124_v49 = vsel %vm76_vm1, %v121_v47, %v114_v48 }
 0x26f   :  { %127 = vst.msk [vmem:[#allocation7] sm:$0x3] %vm126_vm4, %v124_v49 }
 0x270   :  { %241 = shalt.err (!%p238_p5)
}
 0x271   :  { %138 = dma.vmem_to_hbm [thread:$0]  %s136_s4, 32, %s316_s3, [#allocation4]  }
 0x272   :  { %254 = dma.done.wait [#allocation4], 32  }
 0x273   :  { %255 = vsyncadd [#allocation4], 4294967264 }
 0x274   :  { %256 = dma.done.wait [#allocation9], 32  }
 0x275   :  { %257 = vsyncadd [#allocation9], 4294967264 }
 0x276   :  { %155 = vsyncpa [#allocation3], 1 }
 0x277   :  { %156 = vsyncpa [#allocation6], 1 }
 0x278   :  { %157 = vsyncpa [#allocation4], 1 }
 0x279   :  { %158 = vsyncpa [#allocation9], 1 }

</bundles_post_ra>
